<compile_context>
chip_gen: v6e
topology: v6e:2x2x1
jax: 0.10.0
libtpu: 0.0.40
codegen_flags: <defaults>
</compile_context>

<pallas_src>
import functools
import math

import jax
import jax.numpy as jnp
from jax import lax
from jax.experimental import pallas as pl
from jax.experimental.pallas import tpu as pltpu

H1 = 256       # feature layer 1 width
H2 = 128       # feature layer 2 width
HH = 128       # fused head hidden width (64 value + 64 advantage)
LANE = 128
ROW_ALIGN = 16  # sublane rows, bf16 packing (covers f32's 8 as well)


def _round_up(x, m):
    return ((x + m - 1) // m) * m


def _choose_tile(batch, block_b, min_split_rows=1024):
    """Rows per grid step.

    Small batches -> one grid step (per-step fixed cost ~0.35us dominates).
    Batches >= min_split_rows -> an even number of steps (>= 2), each capped
    at ~block_b rows, so v7x megacore gets a balanced split.
    """
    rows = _round_up(batch, ROW_ALIGN)
    if rows < min_split_rows:
        return rows
    steps = max(2, pl.cdiv(rows, _round_up(block_b, ROW_ALIGN)))
    if steps % 2:
        steps += 1
    return _round_up(pl.cdiv(rows, steps), ROW_ALIGN)


def _vmem_bytes_estimate(tb, in_dim, head_pad, x_bpe, w_bpe, out_bpe, bias_w):
    """Rough upper bound on per-core VMEM use (I/O buffers + kernel temporaries)."""
    est = 2 * tb * in_dim * x_bpe                      # x tile (double-buffered)
    est += 2 * tb * head_pad * out_bpe                 # out tile (double-buffered)
    w_elems = in_dim * H1 + H1 * H2 + H2 * HH + HH * head_pad
    est += 2 * (w_elems * w_bpe + bias_w * 4)          # weights + packed biases
    # In-kernel activation temporaries (f32 + compute-dtype copies), upper bound.
    est += tb * ((H1 + H2 + HH) * (4 + w_bpe) + head_pad * 8)
    return est


def dueling_q_kernel(x_ref, w1_ref, w2_ref, wh1_ref, wh2_ref, b_ref, out_ref,
                     *, n_actions, head_pad, compute_dtype):
    # Packed biases (all float32): [b1 | b2 | bh1 | bh2_padded]
    b1 = b_ref[:, 0:H1]
    b2 = b_ref[:, H1:H1 + H2]
    bh1 = b_ref[:, H1 + H2:H1 + H2 + HH]
    bh2 = b_ref[:, H1 + H2 + HH:H1 + H2 + HH + head_pad]

    x = x_ref[...]                                   # already in compute dtype

    # Feature extractor: Linear(D,256)+ReLU, Linear(256,128)+ReLU (f32 accumulation).
    h = jnp.dot(x, w1_ref[...], preferred_element_type=jnp.float32) + b1
    h = jnp.maximum(h, 0.0)
    f = jnp.dot(h.astype(compute_dtype), w2_ref[...],
                preferred_element_type=jnp.float32) + b2
    f = jnp.maximum(f, 0.0)

    # Fused value|advantage hidden layer: one full-width (128,128) matmul + ReLU.
    g = jnp.dot(f.astype(compute_dtype), wh1_ref[...],
                preferred_element_type=jnp.float32) + bh1
    g = jnp.maximum(g, 0.0)

    # Fused block-diagonal output layer, lane-padded:
    #   columns [0, A)   -> advantages
    #   column  A        -> value
    #   columns (A, pad) -> exact zeros (zero weights + zero bias)
    out2 = jnp.dot(g.astype(compute_dtype), wh2_ref[...],
                   preferred_element_type=jnp.float32) + bh2

    col = lax.broadcasted_iota(jnp.int32, out2.shape, 1)
    value = jnp.sum(jnp.where(col == n_actions, out2, 0.0), axis=-1, keepdims=True)
    total = jnp.sum(out2, axis=-1, keepdims=True)             # = sum(adv) + value
    adv_mean = (total - value) * (1.0 / n_actions)            # mean over the A real lanes

    # q valid in the first n_actions lanes; padded lanes hold value - adv_mean
    # (non-zero!) and must be ignored by any consumer of the padded slab.
    out_ref[...] = (out2 + (value - adv_mean)).astype(out_ref.dtype)


def dueling_q_forward(x, fused, *, block_b=2048, out_dtype=jnp.bfloat16,
                      return_padded=False):
    """Full forward pass with a batch-tiled, weight-resident Pallas kernel."""
    if x.ndim == 1:                     # mirrors PyTorch `if x.dim() == 1: unsqueeze(0)`
        x = x[None, :]
    compute_dtype = fused["w1"].dtype
    x = x.astype(compute_dtype)         # cast once here: halves x DMA when bf16
    batch, in_dim = x.shape
    n_actions = fused["n_actions"]
    head_pad = fused["wh2"].shape[1]
    bias_w = fused["b"].shape[1]

    tb = _choose_tile(batch, block_b)
    grid = (pl.cdiv(batch, tb),)

    # Only raise the scoped-VMEM limit when a (user-requested) huge tile needs it.
    est = _vmem_bytes_estimate(tb, in_dim, head_pad,
                               x.dtype.itemsize, fused["w1"].dtype.itemsize,
                               jnp.dtype(out_dtype).itemsize, bias_w)
    vmem_limit = None
    if est > 12 * 1024 * 1024:
        vmem_limit = min(int(est * 1.25) + (2 << 20), 64 * 1024 * 1024)

    kernel = functools.partial(
        dueling_q_kernel,
        n_actions=n_actions,
        head_pad=head_pad,
        compute_dtype=compute_dtype,
    )

    # TODO(perf): for a pure DQN training step, the downstream gather/max over
    # actions could be fused in here (scalar-prefetched action indices) to
    # shrink writeback to (B, 1); kept separate to preserve module semantics.
    q_padded = pl.pallas_call(
        kernel,
        out_shape=jax.ShapeDtypeStruct((batch, head_pad), out_dtype),
        grid=grid,
        in_specs=[
            pl.BlockSpec((tb, in_dim), lambda i: (i, 0)),          # x tile
            pl.BlockSpec((in_dim, H1), lambda i: (0, 0)),          # W1 (VMEM-resident)
            pl.BlockSpec((H1, H2), lambda i: (0, 0)),              # W2
            pl.BlockSpec((H2, HH), lambda i: (0, 0)),              # fused head hidden W
            pl.BlockSpec((HH, head_pad), lambda i: (0, 0)),        # fused block-diag head W
            pl.BlockSpec((1, bias_w), lambda i: (0, 0)),           # packed biases
        ],
        out_specs=pl.BlockSpec((tb, head_pad), lambda i: (i, 0)),  # lane-dense padded q
        compiler_params=pltpu.CompilerParams(
            dimension_semantics=("parallel",),                     # megacore on v7x
            vmem_limit_bytes=vmem_limit,
        ),
    )(x, fused["w1"], fused["w2"], fused["wh1"], fused["wh2"], fused["b"])

    if return_padded:
        return q_padded          # caller must ignore lanes >= n_actions
    return q_padded[:, :n_actions]


def init_linear(key, fan_in, fan_out):
    """PyTorch-style Linear init: U(-1/sqrt(fan_in), 1/sqrt(fan_in)).

    Weight stored as (in_features, out_features); bias as (1, out_features).
    """
    kw, kb = jax.random.split(key)
    bound = 1.0 / math.sqrt(fan_in)
    w = jax.random.uniform(kw, (fan_in, fan_out), jnp.float32, -bound, bound)
    b = jax.random.uniform(kb, (1, fan_out), jnp.float32, -bound, bound)
    return w, b


def init_params(key, input_size, n_actions):
    keys = jax.random.split(key, 6)
    p = {}
    p["w1"], p["b1"] = init_linear(keys[0], input_size, H1)
    p["w2"], p["b2"] = init_linear(keys[1], H1, H2)
    p["wv1"], p["bv1"] = init_linear(keys[2], H2, 64)
    p["wv2"], p["bv2"] = init_linear(keys[3], 64, 1)
    p["wa1"], p["ba1"] = init_linear(keys[4], H2, 64)
    p["wa2"], p["ba2"] = init_linear(keys[5], 64, n_actions)
    return p


def fuse_params(p, *, param_dtype=jnp.bfloat16):
    """Build fused / padded / packed parameters consumed by the kernel.

    Use param_dtype=jnp.float32 (costs <150 KiB extra DMA) if bit-closer
    parity with the float32 PyTorch module is required.
    """
    n_actions = p["wa2"].shape[1]
    head_pad = _round_up(n_actions + 1, LANE)

    # Fused head hidden layer: [Wv1 | Wa1] -> (128, 128); [bv1 | ba1] -> (1, 128)
    wh1 = jnp.concatenate([p["wv1"], p["wa1"]], axis=1)
    bh1 = jnp.concatenate([p["bv1"], p["ba1"]], axis=1)

    # Fused block-diagonal output layer, lane-padded to head_pad:
    #   rows 64:128 (advantage hidden) feed columns [0, A)
    #   rows  0:64  (value hidden)     feed column  A
    wh2 = jnp.zeros((HH, head_pad), jnp.float32)
    wh2 = wh2.at[64:128, :n_actions].set(p["wa2"])
    wh2 = wh2.at[0:64, n_actions:n_actions + 1].set(p["wv2"])
    bh2 = jnp.zeros((1, head_pad), jnp.float32)
    bh2 = bh2.at[:, :n_actions].set(p["ba2"])
    bh2 = bh2.at[:, n_actions:n_actions + 1].set(p["bv2"])

    # Pack all biases into one f32 operand (fewer DMA descriptors per call).
    b_packed = jnp.concatenate([p["b1"], p["b2"], bh1, bh2], axis=1).astype(jnp.float32)

    return {
        "w1": p["w1"].astype(param_dtype),
        "w2": p["w2"].astype(param_dtype),
        "wh1": wh1.astype(param_dtype),
        "wh2": wh2.astype(param_dtype),
        "b": b_packed,
        "n_actions": n_actions,
    }


def reference_forward_f32(x, p):
    """Pure-JAX float32 reference (exact PyTorch semantics)."""
    if x.ndim == 1:
        x = x[None, :]
    h = jax.nn.relu(x @ p["w1"] + p["b1"])
    f = jax.nn.relu(h @ p["w2"] + p["b2"])
    v = jax.nn.relu(f @ p["wv1"] + p["bv1"]) @ p["wv2"] + p["bv2"]
    a = jax.nn.relu(f @ p["wa1"] + p["ba1"]) @ p["wa2"] + p["ba2"]
    return v + (a - a.mean(axis=-1, keepdims=True))


def reference_forward_matched(x, p, compute_dtype=jnp.bfloat16, out_dtype=jnp.bfloat16):
    """Pure-JAX reference mirroring the kernel's precision (bf16 MXU, f32 accum, bf16 out)."""
    if x.ndim == 1:
        x = x[None, :]

    def mm(a, w):
        return jnp.dot(a.astype(compute_dtype), w.astype(compute_dtype),
                       preferred_element_type=jnp.float32)

    h = jax.nn.relu(mm(x, p["w1"]) + p["b1"])
    f = jax.nn.relu(mm(h, p["w2"]) + p["b2"])
    v = mm(jax.nn.relu(mm(f, p["wv1"]) + p["bv1"]), p["wv2"]) + p["bv2"]
    a = mm(jax.nn.relu(mm(f, p["wa1"]) + p["ba1"]), p["wa2"]) + p["ba2"]
    q = v + (a - a.mean(axis=-1, keepdims=True))
    return q.astype(out_dtype)


if __name__ == "__main__":
    key = jax.random.PRNGKey(0)
    k_param, k_x, k_x2 = jax.random.split(key, 3)

    # observation_space_shape = (8,), action_space_n = 4
    input_size = 8
    n_actions = 4

    raw_params = init_params(k_param, input_size, n_actions)
    fused_params = fuse_params(raw_params, param_dtype=jnp.bfloat16)

    # Small batch (single grid step path).
    x_small = jax.random.normal(k_x, (2, input_size), jnp.float32)
    q_small = jax.block_until_ready(dueling_q_forward(x_small, fused_params))
    assert q_small.shape == (2, n_actions)

    # Larger batch: exercises the multi-step, even-split (megacore) grid and a
    # partial final block.  Data is still tiny (2500 x 8 floats).
    x_big = jax.random.normal(k_x2, (2500, input_size), jnp.float32)
    q_big = jax.block_until_ready(dueling_q_forward(x_big, fused_params))
    assert q_big.shape == (2500, n_actions)

    # Tight check vs. a reference using the kernel's mixed precision (bf16 MXU,
    # f32 accumulation, bf16 output).
    for x_in, q_out in ((x_small, q_small), (x_big, q_big)):
        q_kernel = q_out.astype(jnp.float32)
        q_matched = reference_forward_matched(x_in, raw_params).astype(jnp.float32)
        assert jnp.allclose(q_kernel, q_matched, atol=1e-2, rtol=1e-2), \
            "mismatch vs matched-precision reference"

    # Loose sanity check vs. the full-f32 reference (bf16 weight/output error budget).
    q_f32 = reference_forward_f32(x_small, raw_params)
    assert jnp.allclose(q_small.astype(jnp.float32), q_f32, atol=5e-2, rtol=5e-2), \
        "mismatch vs f32 reference"

    print("KERNEL_OK")
</pallas_src>

<mosaic_0001>
module attributes {stable_mosaic.version = 11 : i64} {
  func.func @dueling_q_kernel(%arg0: i32, %arg1: memref<16x8xbf16, #tpu.memory_space<vmem>>, %arg2: memref<8x256xbf16, #tpu.memory_space<vmem>>, %arg3: memref<256x128xbf16, #tpu.memory_space<vmem>>, %arg4: memref<128x128xbf16, #tpu.memory_space<vmem>>, %arg5: memref<128x128xbf16, #tpu.memory_space<vmem>>, %arg6: memref<1x640xf32, #tpu.memory_space<vmem>>, %arg7: memref<16x128xbf16, #tpu.memory_space<vmem>>) attributes {dimension_semantics = [#tpu.dimension_semantics<parallel>], iteration_bounds = array<i64: 1>, scalar_prefetch = 0 : i64, scratch_operands = 0 : i64, tpu.core_type = #tpu.core_type<tc>, window_params = [{transform_indices = @transform_0, window_bounds = array<i64: 16, 8>}, {pipeline_mode = #tpu.pipeline_mode<synchronous>, transform_indices = @transform_1, window_bounds = array<i64: 8, 256>}, {pipeline_mode = #tpu.pipeline_mode<synchronous>, transform_indices = @transform_2, window_bounds = array<i64: 256, 128>}, {pipeline_mode = #tpu.pipeline_mode<synchronous>, transform_indices = @transform_3, window_bounds = array<i64: 128, 128>}, {pipeline_mode = #tpu.pipeline_mode<synchronous>, transform_indices = @transform_4, window_bounds = array<i64: 128, 128>}, {pipeline_mode = #tpu.pipeline_mode<synchronous>, transform_indices = @transform_5, window_bounds = array<i64: 1, 640>}, {transform_indices = @transform_6, window_bounds = array<i64: 16, 128>}]} {
    %c0 = arith.constant 0 : index
    %c0_0 = arith.constant 0 : index
    %0 = vector.load %arg6[%c0, %c0_0] : memref<1x640xf32, #tpu.memory_space<vmem>>, vector<1x256xf32>
    %c0_1 = arith.constant 0 : index
    %c256 = arith.constant 256 : index
    %1 = vector.load %arg6[%c0_1, %c256] : memref<1x640xf32, #tpu.memory_space<vmem>>, vector<1x128xf32>
    %c0_2 = arith.constant 0 : index
    %c384 = arith.constant 384 : index
    %2 = vector.load %arg6[%c0_2, %c384] : memref<1x640xf32, #tpu.memory_space<vmem>>, vector<1x128xf32>
    %c0_3 = arith.constant 0 : index
    %c512 = arith.constant 512 : index
    %3 = vector.load %arg6[%c0_3, %c512] : memref<1x640xf32, #tpu.memory_space<vmem>>, vector<1x128xf32>
    %c0_4 = arith.constant 0 : index
    %c0_5 = arith.constant 0 : index
    %4 = vector.load %arg1[%c0_4, %c0_5] : memref<16x8xbf16, #tpu.memory_space<vmem>>, vector<16x8xbf16>
    %c0_6 = arith.constant 0 : index
    %c0_7 = arith.constant 0 : index
    %5 = vector.load %arg2[%c0_6, %c0_7] : memref<8x256xbf16, #tpu.memory_space<vmem>>, vector<8x256xbf16>
    %cst = arith.constant dense<0.000000e+00> : vector<16x256xf32>
    %6 = tpu.matmul %4, %5, %cst {dimension_numbers = #tpu.dot_dimension_numbers<[1], [0], [0], [1], [0, 0, 1, 1], [], []>} : vector<16x8xbf16>, vector<8x256xbf16>, vector<16x256xf32> -> vector<16x256xf32>
    %7 = vector.broadcast %0 : vector<1x256xf32> to vector<16x256xf32>
    %8 = arith.addf %6, %7 : vector<16x256xf32>
    %cst_8 = arith.constant 0.000000e+00 : f32
    %9 = vector.broadcast %cst_8 : f32 to vector<16x256xf32>
    %10 = arith.maximumf %8, %9 : vector<16x256xf32>
    %11 = arith.truncf %10 : vector<16x256xf32> to vector<16x256xbf16>
    %c0_9 = arith.constant 0 : index
    %c0_10 = arith.constant 0 : index
    %12 = vector.load %arg3[%c0_9, %c0_10] : memref<256x128xbf16, #tpu.memory_space<vmem>>, vector<256x128xbf16>
    %cst_11 = arith.constant dense<0.000000e+00> : vector<16x128xf32>
    %13 = tpu.matmul %11, %12, %cst_11 {dimension_numbers = #tpu.dot_dimension_numbers<[1], [0], [0], [1], [0, 0, 1, 1], [], []>} : vector<16x256xbf16>, vector<256x128xbf16>, vector<16x128xf32> -> vector<16x128xf32>
    %14 = vector.broadcast %1 : vector<1x128xf32> to vector<16x128xf32>
    %15 = arith.addf %13, %14 : vector<16x128xf32>
    %cst_12 = arith.constant 0.000000e+00 : f32
    %16 = vector.broadcast %cst_12 : f32 to vector<16x128xf32>
    %17 = arith.maximumf %15, %16 : vector<16x128xf32>
    %18 = arith.truncf %17 : vector<16x128xf32> to vector<16x128xbf16>
    %c0_13 = arith.constant 0 : index
    %c0_14 = arith.constant 0 : index
    %19 = vector.load %arg4[%c0_13, %c0_14] : memref<128x128xbf16, #tpu.memory_space<vmem>>, vector<128x128xbf16>
    %cst_15 = arith.constant dense<0.000000e+00> : vector<16x128xf32>
    %20 = tpu.matmul %18, %19, %cst_15 {dimension_numbers = #tpu.dot_dimension_numbers<[1], [0], [0], [1], [0, 0, 1, 1], [], []>} : vector<16x128xbf16>, vector<128x128xbf16>, vector<16x128xf32> -> vector<16x128xf32>
    %21 = vector.broadcast %2 : vector<1x128xf32> to vector<16x128xf32>
    %22 = arith.addf %20, %21 : vector<16x128xf32>
    %cst_16 = arith.constant 0.000000e+00 : f32
    %23 = vector.broadcast %cst_16 : f32 to vector<16x128xf32>
    %24 = arith.maximumf %22, %23 : vector<16x128xf32>
    %25 = arith.truncf %24 : vector<16x128xf32> to vector<16x128xbf16>
    %c0_17 = arith.constant 0 : index
    %c0_18 = arith.constant 0 : index
    %26 = vector.load %arg5[%c0_17, %c0_18] : memref<128x128xbf16, #tpu.memory_space<vmem>>, vector<128x128xbf16>
    %cst_19 = arith.constant dense<0.000000e+00> : vector<16x128xf32>
    %27 = tpu.matmul %25, %26, %cst_19 {dimension_numbers = #tpu.dot_dimension_numbers<[1], [0], [0], [1], [0, 0, 1, 1], [], []>} : vector<16x128xbf16>, vector<128x128xbf16>, vector<16x128xf32> -> vector<16x128xf32>
    %28 = vector.broadcast %3 : vector<1x128xf32> to vector<16x128xf32>
    %29 = arith.addf %27, %28 : vector<16x128xf32>
    %30 = tpu.iota {dimensions = array<i32: 1>} : vector<16x128xi32>
    %c4_i32 = arith.constant 4 : i32
    %31 = vector.broadcast %c4_i32 : i32 to vector<16x128xi32>
    %32 = arith.cmpi eq, %30, %31 : vector<16x128xi32>
    %cst_20 = arith.constant 0.000000e+00 : f32
    %33 = vector.broadcast %cst_20 : f32 to vector<16x128xf32>
    %34 = arith.select %32, %29, %33 : vector<16x128xi1>, vector<16x128xf32>
    %cst_21 = arith.constant dense<0.000000e+00> : vector<16xf32>
    %35 = vector.multi_reduction <add>, %34, %cst_21 [1] : vector<16x128xf32> to vector<16xf32>
    %36 = vector.shape_cast %35 : vector<16xf32> to vector<16x1xf32>
    %cst_22 = arith.constant dense<0.000000e+00> : vector<16xf32>
    %37 = vector.multi_reduction <add>, %29, %cst_22 [1] : vector<16x128xf32> to vector<16xf32>
    %38 = vector.shape_cast %37 : vector<16xf32> to vector<16x1xf32>
    %39 = arith.subf %38, %36 : vector<16x1xf32>
    %cst_23 = arith.constant 2.500000e-01 : f32
    %40 = vector.broadcast %cst_23 : f32 to vector<16x1xf32>
    %41 = arith.mulf %39, %40 : vector<16x1xf32>
    %42 = arith.subf %36, %41 : vector<16x1xf32>
    %43 = vector.broadcast %42 : vector<16x1xf32> to vector<16x128xf32>
    %44 = arith.addf %29, %43 : vector<16x128xf32>
    %45 = arith.truncf %44 : vector<16x128xf32> to vector<16x128xbf16>
    %c0_24 = arith.constant 0 : index
    %c0_25 = arith.constant 0 : index
    %46 = vector.load %arg7[%c0_24, %c0_25] : memref<16x128xbf16, #tpu.memory_space<vmem>>, vector<16x128xbf16>
    tpu.vector_store %arg7[%c0_24, %c0_25], %45 {strides = array<i32>} : memref<16x128xbf16, #tpu.memory_space<vmem>>, vector<16x128xbf16>,
    return
  }
  func.func @transform_0(%arg0: i32) -> (i32, i32) {
    %c0_i32 = arith.constant 0 : i32
    %c0_i32_0 = arith.constant 0 : i32
    return %arg0, %c0_i32 : i32, i32
  }
  func.func @transform_1(%arg0: i32) -> (i32, i32) {
    %c0_i32 = arith.constant 0 : i32
    %c0_i32_0 = arith.constant 0 : i32
    %c0_i32_1 = arith.constant 0 : i32
    return %c0_i32, %c0_i32_0 : i32, i32
  }
  func.func @transform_2(%arg0: i32) -> (i32, i32) {
    %c0_i32 = arith.constant 0 : i32
    %c0_i32_0 = arith.constant 0 : i32
    %c0_i32_1 = arith.constant 0 : i32
    return %c0_i32, %c0_i32_0 : i32, i32
  }
  func.func @transform_3(%arg0: i32) -> (i32, i32) {
    %c0_i32 = arith.constant 0 : i32
    %c0_i32_0 = arith.constant 0 : i32
    %c0_i32_1 = arith.constant 0 : i32
    return %c0_i32, %c0_i32_0 : i32, i32
  }
  func.func @transform_4(%arg0: i32) -> (i32, i32) {
    %c0_i32 = arith.constant 0 : i32
    %c0_i32_0 = arith.constant 0 : i32
    %c0_i32_1 = arith.constant 0 : i32
    return %c0_i32, %c0_i32_0 : i32, i32
  }
  func.func @transform_5(%arg0: i32) -> (i32, i32) {
    %c0_i32 = arith.constant 0 : i32
    %c0_i32_0 = arith.constant 0 : i32
    %c0_i32_1 = arith.constant 0 : i32
    return %c0_i32, %c0_i32_0 : i32, i32
  }
  func.func @transform_6(%arg0: i32) -> (i32, i32) {
    %c0_i32 = arith.constant 0 : i32
    %c0_i32_0 = arith.constant 0 : i32
    return %arg0, %c0_i32 : i32, i32
  }
}

</mosaic_0001>

<bundles_post_ra>
// kernel: tpu_custom_call.1
= control target key start
LH: loop header
LB: loop body
LE: loop exit
PB: predicated region body
PF: predicated region fallthrough
CT: control target
= control target key end

     0   :  { %11 = vsyncpa [#allocation3], 0  ;;  %s1180_s0 = inlined_call_operand.hbm [shape: bf16[2,8], index: 0, kind: input, shape index: {}]   ;;  %s1181_s1 = inlined_call_operand.hbm [shape: bf16[8,256], index: 1, kind: input, shape index: {}]   ;;  %s1182_s2 = inlined_call_operand.hbm [shape: bf16[256,128], index: 2, kind: input, shape index: {}]   ;;  %s1183_s3 = inlined_call_operand.hbm [shape: bf16[128,128], index: 3, kind: input, shape index: {}]   ;;  %s1184_s4 = inlined_call_operand.hbm [shape: bf16[128,128], index: 4, kind: input, shape index: {}]   ;;  %s1185_s5 = inlined_call_operand.vmem [shape: f32[1,640], index: 5, kind: input, shape index: {}]   ;;  %s1186_s6 = inlined_call_operand.hbm [shape: bf16[2,128], index: 6, kind: output, shape index: {}]  }
   0x1   :  { %12 = vsyncpa [#allocation6], 0 }
   0x2   :  { %13 = vsyncpa [#allocation9], 0 }
   0x3   :  { %14 = vsyncpa [#allocation4], 0 }
   0x4   :  { %19 = vsyncadd [#allocation3], 112  ;;  %s1047_s21 = smov [#allocation5]  }
   0x5   :  { %s33_s22 = sshll.u32 %s1047_s21, 4  ;;  %s34_s22 = int_to_ptr.vmem [resolvable:$true] %s33_s22 }
   0x6   :  { %s927_s23 = scalar_lea.vmem %s34_s22, 128  ;;  %p932_p1 = scmp.lt.s32.totalorder %s34_s22, %s34_s22 }
   0x7   :  { %p928_p0 = scmp.ne.s32.totalorder %s34_s22, %s927_s23  ;;  %p933_p2 = scmp.lt.s32.totalorder %s927_s23, %s927_s23 }
   0x9   :  { %p934_p3 = por %p933_p2, %p932_p1 }
   0xb   :  { %p935_p4 = pnand %p934_p3, %p928_p0 }
   0xd   :  { %938 = shalt.err (!%p935_p4)
}
   0xe   :  { %36 = dma.hbm_to_vmem [thread:$0]  %s1181_s1, 128, %s34_s22, [#allocation6]  }
   0xf   :  { %s1048_s26 = smov [#allocation8]   ;;  %s1049_s28 = smov [#allocation2]  }
  0x10   :  { %s54_s27 = sshll.u32 %s1048_s26, 4  ;;  %s20_s29 = sshll.u32 %s1049_s28, 4  ;;  %s55_s27 = int_to_ptr.vmem [resolvable:$true] %s54_s27  ;;  %s21_s29 = int_to_ptr.vmem [resolvable:$true] %s20_s29 }
  0x11   :  { %s947_s30 = scalar_lea.vmem %s55_s27, 1024  ;;  %p952_p6 = scmp.lt.s32.totalorder %s55_s27, %s55_s27 }
  0x12   :  { %p948_p5 = scmp.ne.s32.totalorder %s55_s27, %s947_s30  ;;  %p953_p7 = scmp.lt.s32.totalorder %s947_s30, %s947_s30 }
  0x14   :  { %p954_p8 = por %p953_p7, %p952_p6 }
  0x16   :  { %p955_p9 = pnand %p954_p8, %p948_p5 }
  0x18   :  { %958 = shalt.err (!%p955_p9)
}
  0x19   :  { %s1050_s7 = smov 64   ;;  %s1051_s8 = smov 4  }
  0x1a   :  { %60 = dma.hbm_to_vmem [thread:$0]  %s1183_s3, 1024, %s55_s27, [#allocation9], %s1050_s7, %s1050_s7, %s1051_s8  }
  0x1b   :  { %s967_s1 = scalar_lea.vmem %s21_s29, 16  ;;  %s971_s11 = scalar_lea.vmem %s21_s29, 128 }
  0x1c   :  { %p968_p10 = scmp.ne.s32.totalorder %s21_s29, %s967_s1  ;;  %p972_p11 = scmp.lt.s32.totalorder %s21_s29, %s21_s29 }
  0x1d   :  { %p973_p12 = scmp.lt.s32.totalorder %s971_s11, %s967_s1 }
  0x1f   :  { %p974_p13 = por %p973_p12, %p972_p11 }
  0x21   :  { %p975_p0 = pnand %p974_p13, %p968_p10 }
  0x23   :  { %978 = shalt.err (!%p975_p0)
}
  0x24   :  { %s1052_s12 = smov 16   ;;  %s1053_s13 = smov 1  }
  0x25   :  { %26 = dma.hbm_to_vmem [thread:$0]  %s1180_s0, 16, %s21_s29, [#allocation3], %s1052_s12, %s1052_s12, %s1053_s13  }
  0x26   :  { %s1054_s16 = smov [#allocation7]   ;;  %s1055_s17 = smov [#allocation10]  }
  0x27   :  { %s42_s3 = sshll.u32 %s1054_s16, 4  ;;  %s66_s18 = sshll.u32 %s1055_s17, 4  ;;  %s43_s3 = int_to_ptr.vmem [resolvable:$true] %s42_s3  ;;  %s67_s18 = int_to_ptr.vmem [resolvable:$true] %s66_s18 }
  0x28   :  { %s987_s19 = scalar_lea.vmem %s43_s3, 2048  ;;  %p992_p2 = scmp.lt.s32.totalorder %s43_s3, %s43_s3 }
  0x29   :  { %p988_p1 = scmp.ne.s32.totalorder %s43_s3, %s987_s19  ;;  %p993_p3 = scmp.lt.s32.totalorder %s987_s19, %s987_s19 }
  0x2b   :  { %p994_p4 = por %p993_p3, %p992_p2 }
  0x2d   :  { %p995_p5 = pnand %p994_p4, %p988_p1 }
  0x2f   :  { %998 = shalt.err (!%p995_p5)
}
  0x30   :  { %48 = dma.hbm_to_vmem [thread:$0]  %s1182_s2, 2048, %s43_s3, [#allocation6], %s1050_s7, %s1050_s7, %s1051_s8  }
  0x31   :  { %s1007_s0 = scalar_lea.vmem %s67_s18, 1024  ;;  %p1012_p7 = scmp.lt.s32.totalorder %s67_s18, %s67_s18 }
  0x32   :  { %p1008_p6 = scmp.ne.s32.totalorder %s67_s18, %s1007_s0  ;;  %p1013_p8 = scmp.lt.s32.totalorder %s1007_s0, %s1007_s0 }
  0x34   :  { %p1014_p9 = por %p1013_p8, %p1012_p7 }
  0x36   :  { %p1015_p10 = pnand %p1014_p9, %p1008_p6 }
  0x38   :  { %1018 = shalt.err (!%p1015_p10)
}
  0x39   :  { %72 = dma.hbm_to_vmem [thread:$0]  %s1184_s4, 1024, %s67_s18, [#allocation9], %s1050_s7, %s1050_s7, %s1051_s8  }
  0x3a   :  { %1039 = dma.done.wait [#allocation3], 128  }
  0x3b   :  { %1040 = vsyncadd [#allocation3], 4294967168 }
  0x3c   :  { %1041 = dma.done.wait [#allocation6], 2176  }
  0x3d   :  { %1042 = vsyncadd [#allocation6], 4294965120 }
  0x3e   :  { %1043 = dma.done.wait [#allocation9], 2048  }
  0x3f   :  { %1044 = vsyncadd [#allocation9], 4294965248  ;;  %v105_v0 = vlaneseq  ;;  %v1056_v1 = vmov 0   ;;  %v1057_v2 = vmov 1966171168   ;;  %v103_v7 = vld [vmem:[#allocation5] sm:$0xff] }
  0x40   :  { %220 = vmatprep.mubr.bf16.mxu0 %v1056_v1  ;;  %v128_v3 = vunpack.c.l.s4 %v1057_v2  ;;  %vm181_vm0 = vcmask 1043456   ;;  %v95_v8 = vld [vmem:[#allocation2] sm:$0x1]  ;;  %v96_v9 = vld [vmem:[#allocation2 + $0x1] sm:$0x1]  ;;  %v748_v10 = vcombine.high %v103_v7, %v103_v7  ;;  %v747_v11 = vcombine.low %v103_v7, %v103_v7  ;;  %v887_v24 = vld [vmem:[#allocation7 + $0x78] sm:$0xff]  }
  0x41   :  { %v1124_v4 = vshrl.u32 %v105_v0, 7  ;;  %v97_v12 = vld [vmem:[#allocation2 + $0x2] sm:$0x1]  ;;  %v98_v13 = vld [vmem:[#allocation2 + $0x3] sm:$0x1]  ;;  %v123_v15 = vcombine.low %v95_v8, %v96_v9  ;;  %v888_v26 = vld [vmem:[#allocation7 + $0x38] sm:$0xff]   ;;  %791 = vmatprep.subr.bf16.mxu1 %v887_v24 }
  0x42   :  { %v129_v5 = vunpack.c.0.s8 %v128_v3  ;;  %v99_v14 = vld [vmem:[#allocation2 + $0x4] sm:$0x1]  ;;  %v100_v16 = vld [vmem:[#allocation2 + $0x5] sm:$0x1]  ;;  %v101_v17 = vld [vmem:[#allocation2 + $0x6] sm:$0x1]  ;;  %v124_v19 = vcombine.low %v97_v12, %v98_v13  ;;  %749 = vmatprep.subr.msk.bf16.mxu0 %vm181_vm0, %v748_v10  ;;  %792 = vmatpush3.bf16.msra.mxu1 %v888_v26 }
  0x43   :  { %v102_v18 = vld [vmem:[#allocation2 + $0x7] sm:$0x1]  ;;  %v183_v20 = vsel %vm181_vm0, %v747_v11, 0  ;;  %v125_v21 = vcombine.low %v99_v14, %v100_v16  ;;  %v891_v33 = vld [vmem:[#allocation7 + $0x68] sm:$0xff]   ;;  %vm177_vm1 = vcmask 64512   ;;  %v893_v38 = vld [vmem:[#allocation7 + $0x60] sm:$0xff]  }
  0x44   :  { %v1127_v6 = vsub.s32 %v129_v5, %v1124_v4  ;;  %v126_v22 = vcombine.low %v101_v17, %v102_v18  ;;  %203 = vmatpush1.bf16.msra.mxu0 %v183_v20  ;;  %v889_v29 = vld [vmem:[#allocation7 + $0x70] sm:$0xff]   ;;  %v892_v36 = vld [vmem:[#allocation7 + $0x28] sm:$0xff]   ;;  %v894_v39 = vld [vmem:[#allocation7 + $0x20] sm:$0xff]   ;;  %v1058_v49 = vmov 0.0   ;;  %v111_v53 = vsub.s32 1, %v1124_v4 }
  0x45   :  { %v890_v31 = vld [vmem:[#allocation7 + $0x30] sm:$0xff]   ;;  %793 = vmatprep.subr.bf16.mxu1 %v889_v29  ;;  %v895_v40 = vld [vmem:[#allocation7 + $0x58] sm:$0xff]   ;;  %v899_v44 = vld [vmem:[#allocation7 + $0x48] sm:$0xff]   ;;  %831 = vmatprep.subr.bf16.mxu0 %v1058_v49  ;;  %v107_v54 = vsub.s32 0, %v1124_v4  ;;  %vm1059_vm2 = vmmov 0  }
  0x46   :  { %v133_v23 = vrot.slane %v123_v15, %v1127_v6  ;;  %v140_v25 = vrot.slane %v124_v19, %v1127_v6  ;;  %v147_v27 = vrot.slane %v125_v21, %v1127_v6  ;;  %v154_v28 = vrot.slane %v126_v22, %v1127_v6  ;;  %794 = vmatpush3.bf16.msra.mxu1 %v890_v31  ;;  %v896_v41 = vld [vmem:[#allocation7 + $0x18] sm:$0xff]   ;;  %v897_v42 = vld [vmem:[#allocation7 + $0x50] sm:$0xff]   ;;  %v900_v45 = vld [vmem:[#allocation7 + $0x8] sm:$0xff]  }
  0x47   :  { %795 = vmatprep.subr.bf16.mxu1 %v891_v33  ;;  %v898_v43 = vld [vmem:[#allocation7 + $0x10] sm:$0xff]   ;;  %v901_v46 = vld [vmem:[#allocation7 + $0x40] sm:$0xff]   ;;  %v903_v48 = vld [vmem:[#allocation8 + $0x38] sm:$0xff]  }
  0x48   :  { %v155_v30 = vcombine.low %v133_v23, %v140_v25  ;;  %v156_v32 = vcombine.low %v147_v27, %v154_v28  ;;  %v902_v47 = vld [vmem:[#allocation7] sm:$0xff]   ;;  %v904_v50 = vld [vmem:[#allocation8 + $0x30] sm:$0xff]   ;;  %v905_v51 = vld [vmem:[#allocation8 + $0x28] sm:$0xff]  }
  0x49   :  { %v906_v52 = vld [vmem:[#allocation8 + $0x20] sm:$0xff]   ;;  %v91_v55 = vld [vmem:[%s1185_s5] sm:$0x3]  ;;  %v907_v10 = vld [vmem:[#allocation8 + $0x18] sm:$0xff]  }
  0x4a   :  { %v163_v34 = vrot.slane %v155_v30, %v1127_v6  ;;  %v170_v35 = vrot.slane %v156_v32, %v1127_v6  ;;  %796 = vmatpush3.bf16.msra.mxu1 %v892_v36  ;;  %v112_v57 = vrot.slane %v91_v55, %v111_v53  ;;  %v108_v58 = vrot.slane %v91_v55, %v107_v54  ;;  %v908_v11 = vld [vmem:[#allocation8 + $0x10] sm:$0xff]   ;;  %v909_v12 = vld [vmem:[#allocation8 + $0x8] sm:$0xff]   ;;  %v910_v13 = vld [vmem:[#allocation8] sm:$0xff]  }
  0x4b   :  { %797 = vmatprep.subr.bf16.mxu1 %v893_v38  ;;  %v911_v14 = vld [vmem:[#allocation10 + $0x38] sm:$0xff]   ;;  %v912_v15 = vld [vmem:[#allocation10 + $0x30] sm:$0xff]   ;;  %v913_v16 = vld [vmem:[#allocation10 + $0x28] sm:$0xff]  }
  0x4c   :  { %v171_v37 = vcombine.low %v163_v34, %v170_v35  ;;  %v914_v17 = vld [vmem:[#allocation10 + $0x20] sm:$0xff]   ;;  %v915_v18 = vld [vmem:[#allocation10 + $0x18] sm:$0xff]   ;;  %v751_v22 = vld [vmem:[%s1185_s5 + $0x2] ss:$0 sm:$0xff] }
  0x4d   :  { %v916_v31 = vld [vmem:[#allocation10 + $0x10] sm:$0xff]   ;;  %v917_v32 = vld [vmem:[#allocation10 + $0x8] sm:$0xff]   ;;  %v918_v33 = vld [vmem:[#allocation10] sm:$0xff]  }
  0x4e   :  { %750 = vmatmul.mubr.msk.bf16.vlgmr.msra.gmra.mxu0 %vm177_vm1, %v171_v37  ;;  %798 = vmatpush3.bf16.msra.mxu1 %v894_v39  ;;  %v768_v34 = vld [vmem:[%s1185_s5 + $0x3] ss:$0 sm:$0xff] }
  0x4f   :  { %799 = vmatprep.subr.bf16.mxu1 %v895_v40  ;;  %832 = vmatpush3.bf16.msra.mxu0 %v903_v48 }
  0x50   :  { %833 = vmatprep.subr.bf16.mxu0 %v1058_v49  ;;  %847 = vmatprep.mubr.msk.bf16.mxu0 %vm1059_vm2, %v1058_v49 }
  0x52   :  { %800 = vmatpush3.bf16.msra.mxu1 %v896_v41 }
  0x53   :  { %801 = vmatprep.subr.bf16.mxu1 %v897_v42  ;;  %834 = vmatpush3.bf16.msra.mxu0 %v904_v50 }
  0x54   :  { %835 = vmatprep.subr.bf16.mxu0 %v1058_v49 }
  0x56   :  { %802 = vmatpush3.bf16.msra.mxu1 %v898_v43 }
  0x57   :  { %803 = vmatprep.subr.bf16.mxu1 %v899_v44  ;;  %836 = vmatpush3.bf16.msra.mxu0 %v905_v51  ;;  %v641_v44 = vand.u32 127, %v105_v0 }
  0x58   :  { %837 = vmatprep.subr.bf16.mxu0 %v1058_v49 }
  0x59   :  { %vm642_vm3 = vcmp.eq.s32.totalorder %v641_v44, 4 }
  0x5a   :  { %804 = vmatpush3.bf16.msra.mxu1 %v900_v45  ;;  %v777_v45 = vld [vmem:[%s1185_s5 + $0x4] ss:$0 sm:$0xff] }
  0x5b   :  { %805 = vmatprep.subr.bf16.mxu1 %v901_v46  ;;  %838 = vmatpush3.bf16.msra.mxu0 %v906_v52 }
  0x5c   :  { %839 = vmatprep.subr.bf16.mxu0 %v1058_v49 }
  0x5e   :  { %806 = vmatpush3.bf16.msra.mxu1 %v902_v47 }
  0x5f   :  { %851 = vmatprep.subr.bf16.mxu1 %v1058_v49  ;;  %840 = vmatpush3.bf16.msra.mxu0 %v907_v10 }
  0x60   :  { %841 = vmatprep.subr.bf16.mxu0 %v1058_v49 }
  0x63   :  { %842 = vmatpush3.bf16.msra.mxu0 %v908_v11 }
  0x64   :  { %843 = vmatprep.subr.bf16.mxu0 %v1058_v49 }
  0x67   :  { %844 = vmatpush3.bf16.msra.mxu0 %v909_v12 }
  0x68   :  { %845 = vmatprep.subr.bf16.mxu0 %v1058_v49 }
  0x6b   :  { %846 = vmatpush3.bf16.msra.mxu0 %v910_v13 }
 0x10e   :  { %v222_v56 = vpop.f32.mrf.mxu0 }
 0x10f   :  { %v223_v63 = vadd.f32 %v222_v56, %v108_v58 }
 0x110   :  { %v224_v59 = vpop.f32.mrf.mxu0 }
 0x111   :  { %v225_v61 = vadd.f32 %v224_v59, %v112_v57  ;;  %v231_v8 = vmax.f32 %v223_v63, 0.0 }
 0x112   :  { %v226_v60 = vpop.f32.mrf.mxu0 }
 0x113   :  { %v227_v62 = vadd.f32 %v226_v60, %v108_v58  ;;  %v232_v5 = vmax.f32 %v225_v61, 0.0 }
 0x114   :  { %v228_v1 = vpop.f32.mrf.mxu0 }
 0x115   :  { %v229_v2 = vadd.f32 %v228_v1, %v112_v57  ;;  %v233_v3 = vmax.f32 %v227_v62, 0.0 }
 0x117   :  { %v234_v7 = vmax.f32 %v229_v2, 0.0  ;;  %v235_v4 = vpack.c.bf16 %v233_v3, %v231_v8 }
 0x119   :  { %v236_v9 = vpack.c.bf16 %v234_v7, %v232_v5 }
 0x11b   :  { %403 = vmatprep.mubr.bf16.mxu1 %v236_v9 }
 0x11c   :  { %404 = vmatmul.mubr.bf16.vlgmr.msra.gmra.mxu1 %v235_v4 }
 0x11d   :  { %867 = vmatprep.mubr.msk.bf16.mxu1 %vm1059_vm2, %v1058_v49  ;;  %852 = vmatpush3.bf16.msra.mxu1 %v911_v14 }
 0x11e   :  { %853 = vmatprep.subr.bf16.mxu1 %v1058_v49 }
 0x121   :  { %854 = vmatpush3.bf16.msra.mxu1 %v912_v15 }
 0x122   :  { %855 = vmatprep.subr.bf16.mxu1 %v1058_v49 }
 0x125   :  { %856 = vmatpush3.bf16.msra.mxu1 %v913_v16 }
 0x126   :  { %857 = vmatprep.subr.bf16.mxu1 %v1058_v49 }
 0x129   :  { %858 = vmatpush3.bf16.msra.mxu1 %v914_v17 }
 0x12a   :  { %859 = vmatprep.subr.bf16.mxu1 %v1058_v49 }
 0x12d   :  { %860 = vmatpush3.bf16.msra.mxu1 %v915_v18 }
 0x12e   :  { %861 = vmatprep.subr.bf16.mxu1 %v1058_v49 }
 0x131   :  { %862 = vmatpush3.bf16.msra.mxu1 %v916_v31 }
 0x132   :  { %863 = vmatprep.subr.bf16.mxu1 %v1058_v49 }
 0x135   :  { %864 = vmatpush3.bf16.msra.mxu1 %v917_v32 }
 0x136   :  { %865 = vmatprep.subr.bf16.mxu1 %v1058_v49 }
 0x139   :  { %866 = vmatpush3.bf16.msra.mxu1 %v918_v33 }
 0x1dc   :  { %v807_v19 = vpop.f32.mrf.mxu1 }
 0x1de   :  { %v808_v20 = vpop.f32.mrf.mxu1 }
 0x1df   :  { %v809_v21 = vadd.f32 %v808_v20, %v807_v19 }
 0x1e0   :  { %v810_v23 = vpop.f32.mrf.mxu1 }
 0x1e1   :  { %v406_v25 = vadd.f32 %v809_v21, %v751_v22 }
 0x1e2   :  { %v811_v24 = vpop.f32.mrf.mxu1 }
 0x1e3   :  { %v812_v26 = vadd.f32 %v811_v24, %v810_v23  ;;  %v412_v28 = vmax.f32 %v406_v25, 0.0 }
 0x1e5   :  { %v409_v27 = vadd.f32 %v812_v26, %v751_v22 }
 0x1e7   :  { %v413_v29 = vmax.f32 %v409_v27, 0.0 }
 0x1e9   :  { %v414_v30 = vpack.c.bf16 %v413_v29, %v412_v28 }
 0x1eb   :  { %848 = vmatmul.mubr.bf16.vlgmr.msra.gmra.mxu0 %v414_v30 }
 0x2ab   :  { %v519_v35 = vpop.f32.mrf.mxu0 }
 0x2ac   :  { %v520_v37 = vadd.f32 %v768_v34, %v519_v35 }
 0x2ad   :  { %v849_v36 = vpop.f32.mrf.mxu0 }
 0x2ae   :  { %v526_v41 = vmax.f32 %v520_v37, 0.0 }
 0x2af   :  { %v522_v38 = vpop.f32.mrf.mxu0 }
 0x2b0   :  { %v523_v39 = vadd.f32 %v768_v34, %v522_v38 }
 0x2b1   :  { %v850_v40 = vpop.f32.mrf.mxu0 }
 0x2b2   :  { %v527_v42 = vmax.f32 %v523_v39, 0.0 }
 0x2b4   :  { %v528_v43 = vpack.c.bf16 %v527_v42, %v526_v41 }
 0x2b6   :  { %868 = vmatmul.mubr.bf16.vlgmr.msra.gmra.mxu1 %v528_v43 }
 0x376   :  { %v633_v46 = vpop.f32.mrf.mxu1 }
 0x377   :  { %v634_v47 = vadd.f32 %v777_v45, %v633_v46 }
 0x378   :  { %v869_v48 = vpop.f32.mrf.mxu1 }
 0x379   :  { %649 = vadd.xlane.f32.xlu1 %v634_v47  ;;  %v643_v49 = vsel %vm642_vm3, %v634_v47, 0.0 }
 0x37a   :  { %645 = vadd.xlane.f32.xlu0 %v643_v49  ;;  %v636_v50 = vpop.f32.mrf.mxu1 }
 0x37b   :  { %v637_v51 = vadd.f32 %v777_v45, %v636_v50 }
 0x37c   :  { %v870_v52 = vpop.f32.mrf.mxu1 }
 0x37d   :  { %651 = vadd.xlane.f32.xlu1 %v637_v51  ;;  %v644_v53 = vsel %vm642_vm3, %v637_v51, 0.0 }
 0x37e   :  { %647 = vadd.xlane.f32.xlu0 %v644_v53 }
 0x402   :  { %v650_v54 = vpop.xlane.xlu1 %649 }
 0x403   :  { %v646_v55 = vpop.xlane.xlu0 %645 }
 0x404   :  { %v653_v0 = vsub.f32 %v650_v54, %v646_v55 }
 0x406   :  { %v655_v56 = vmul.f32 0.25, %v653_v0  ;;  %v652_v57 = vpop.xlane.xlu1 %651 }
 0x407   :  { %v648_v58 = vpop.xlane.xlu0 %647 }
 0x408   :  { %v654_v59 = vsub.f32 %v652_v57, %v648_v58  ;;  %v657_v60 = vsub.f32 %v646_v55, %v655_v56 }
 0x40a   :  { %v656_v61 = vmul.f32 0.25, %v654_v59  ;;  %v659_v63 = vadd.f32 %v657_v60, %v634_v47 }
 0x40c   :  { %v658_v62 = vsub.f32 %v648_v58, %v656_v61 }
 0x40e   :  { %v660_v1 = vadd.f32 %v658_v62, %v637_v51 }
 0x410   :  { %v661_v2 = vpack.c.bf16 %v660_v1, %v659_v63  ;;  %v786_v3 = vpack.c.bf16 %v660_v1, %v660_v1 }
 0x412   :  { %v670_v5 = vrot.slane %v661_v2, %v1127_v6  ;;  %v677_v7 = vrot.slane %v786_v3, %v1127_v6 }
 0x414   :  { %v678_v8 = vcombine.high %v670_v5, %v670_v5  ;;  %v679_v9 = vcombine.high %v677_v7, %v677_v7  ;;  %v686_v4 = vrot.slane %v670_v5, %v1127_v6  ;;  %v693_v10 = vrot.slane %v677_v7, %v1127_v6  ;;  %787 = vst.sshfl [vmem:[#allocation11] sm:$0x1 pattern:$0x73625140] %v670_v5 }
 0x415   :  { %789 = vst.sshfl [vmem:[#allocation11 + $0x4] sm:$0x1 pattern:$0x73625140] %v677_v7 }
 0x416   :  { %v700_v11 = vrot.slane %v678_v8, %v1127_v6  ;;  %v707_v12 = vrot.slane %v679_v9, %v1127_v6  ;;  %v708_v13 = vcombine.high %v686_v4, %v686_v4  ;;  %v709_v14 = vcombine.high %v693_v10, %v693_v10  ;;  %788 = vst.sshfl [vmem:[#allocation11 + $0x1] sm:$0x1 pattern:$0x73625140] %v678_v8 }
 0x417   :  { %790 = vst.sshfl [vmem:[#allocation11 + $0x5] sm:$0x1 pattern:$0x73625140] %v679_v9 }
 0x418   :  { %v710_v15 = vcombine.high %v700_v11, %v700_v11  ;;  %v711_v16 = vcombine.high %v707_v12, %v707_v12  ;;  %722 = vst [vmem:[#allocation11 + $0x2] sm:$0x1] %v708_v13  ;;  %726 = vst [vmem:[#allocation11 + $0x6] sm:$0x1] %v709_v14 }
 0x41a   :  { %723 = vst [vmem:[#allocation11 + $0x3] sm:$0x1] %v710_v15  ;;  %727 = vst [vmem:[#allocation11 + $0x7] sm:$0x1] %v711_v16 }
 0x41b   :  { %732 = vsyncadd [#allocation4], 112  ;;  %s1060_s5 = smov [#allocation11]  }
 0x41c   :  { %s733_s30 = sshll.u32 %s1060_s5, 4  ;;  %s734_s30 = int_to_ptr.vmem [resolvable:$true] %s733_s30 }
 0x41d   :  { %s1019_s7 = scalar_lea.vmem %s734_s30, 16  ;;  %s1023_s8 = scalar_lea.vmem %s734_s30, 128 }
 0x41e   :  { %p1020_p11 = scmp.ne.s32.totalorder %s734_s30, %s1019_s7  ;;  %p1024_p12 = scmp.lt.s32.totalorder %s734_s30, %s734_s30 }
 0x41f   :  { %p1025_p13 = scmp.lt.s32.totalorder %s1023_s8, %s1019_s7 }
 0x421   :  { %p1026_p0 = por %p1025_p13, %p1024_p12 }
 0x423   :  { %p1027_p1 = pnand %p1026_p0, %p1020_p11 }
 0x425   :  { %1030 = shalt.err (!%p1027_p1)
}
 0x426   :  { %739 = dma.vmem_to_hbm [thread:$0]  %s734_s30, 16, %s1186_s6, [#allocation4], %s1052_s12, %s1052_s12, %s1053_s13  }
 0x427   :  { %1045 = dma.done.wait [#allocation4], 128  }
 0x428   :  { %1046 = vsyncadd [#allocation4], 4294967168 }
 0x429   :  { %743 = vsyncpa [#allocation3], 1 }
 0x42a   :  { %744 = vsyncpa [#allocation6], 1 }
 0x42b   :  { %745 = vsyncpa [#allocation9], 1 }
 0x42c   :  { %746 = vsyncpa [#allocation4], 1 }

</bundles_post_ra>
